<compile_context>
chip_gen: v5e
topology: v5e:2x2
jax: 0.10.0
libtpu: 0.0.40
codegen_flags: <defaults>
</compile_context>

<pallas_src>
import jax
import jax.numpy as jnp
from jax.experimental import pallas as pl
from jax.experimental.pallas import tpu as pltpu

LANE = 128
SUBLANE_BF16 = 16  # bf16 packs two rows per sublane -> 16-row tile granularity


def _round_up(x, m):
    return ((x + m - 1) // m) * m


def _num_tensorcores():
    """Best-effort chip detection: v7x has 2 TensorCores/chip, v5e/v6e have 1."""
    try:
        kind = jax.devices()[0].device_kind.lower()
    except Exception:
        return 1
    return 2 if ("v7" in kind or "7x" in kind) else 1


def _critic_kernel(x_ref, w1_ref, b1_ref, w2_ref, b2_ref, w3_ref, b3_ref, o_ref):
    # Fused 3-layer MLP: bf16 MXU operands, f32 accumulation, f32 biases, VPU ReLUs.
    x = x_ref[...].astype(w1_ref.dtype)  # cast in-kernel (no separate XLA cast pass)
    h1 = jnp.dot(x, w1_ref[...], preferred_element_type=jnp.float32) + b1_ref[...]
    h1 = jnp.maximum(h1, 0.0).astype(w2_ref.dtype)
    h2 = jnp.dot(h1, w2_ref[...], preferred_element_type=jnp.float32) + b2_ref[...]
    h2 = jnp.maximum(h2, 0.0).astype(w3_ref.dtype)
    out = jnp.dot(h2, w3_ref[...], preferred_element_type=jnp.float32) + b3_ref[...]
    o_ref[...] = out.astype(o_ref.dtype)


def critic_forward(x, params, *, compute_dtype=jnp.bfloat16, out_dtype=jnp.float32,
                   max_batch_tile=2048, return_padded=False):
    """Run the Critic MLP as a single fused Pallas kernel.

    x:      [B, input_dim] (any float dtype; cast to `compute_dtype` inside the kernel)
    params: (w1 [in,h], b1 [1,h], w2 [h,h], b2 [1,h], w3 [h,out], b3 [1,out]) in f32.
    out_dtype: jnp.float32 (module-equivalent) or jnp.bfloat16 (halves HBM writeback,
               fine for action selection).
    return_padded: if True, return the 128-lane padded output (skip the column slice
               so a downstream consumer can fuse against it).
    """
    w1, b1, w2, b2, w3, b3 = params
    B, in_dim = x.shape
    hidden = w1.shape[1]
    out_dim = w3.shape[1]

    # Lane-dense output: pad the Q-value dim to 128 so the final store is an
    # unmasked `vst`; padding columns of w3/b3 are zero.
    out_pad = _round_up(out_dim, LANE)

    # Weight prep: bf16 matmul operands (MXU-native, half the DMA/VMEM bytes);
    # biases stay f32 (added to the f32 accumulator). In production prep once per params.
    w1_c = w1.astype(compute_dtype)
    w2_c = w2.astype(compute_dtype)
    w3_p = jnp.zeros((hidden, out_pad), compute_dtype).at[:, :out_dim].set(
        w3.astype(compute_dtype))
    b1_f = b1.reshape(1, hidden).astype(jnp.float32)
    b2_f = b2.reshape(1, hidden).astype(jnp.float32)
    b3_p = jnp.zeros((1, out_pad), jnp.float32).at[:, :out_dim].set(
        b3.reshape(1, out_dim).astype(jnp.float32))
    # NOTE(perf, optional): lane-padding `hidden` to 128 (w1 -> [in,128], w2 -> [128,128])
    # would make h1/h2 lane-dense; neutral-to-small win, verify in bundle before keeping.

    # Batch tiling: biggest tile that fits the budget, 16-row granularity, no host pad;
    # Pallas masks the ragged last tile (independent rows, OOB writes discarded).
    max_batch_tile = _round_up(max(max_batch_tile, SUBLANE_BF16), SUBLANE_BF16)
    batch_tile = min(_round_up(B, SUBLANE_BF16), max_batch_tile)
    # v7x: make sure the (parallel) batch axis has >= 2 steps for medium batches so
    # both TensorCores are used; no-op on v5e/v6e (1 TC).
    if _num_tensorcores() >= 2 and pl.cdiv(B, batch_tile) < 2 \
            and batch_tile >= 4 * SUBLANE_BF16:
        batch_tile = _round_up(pl.cdiv(batch_tile, 2), SUBLANE_BF16)
    grid = (pl.cdiv(B, batch_tile),)

    in_specs = [
        pl.BlockSpec((batch_tile, in_dim), lambda i: (i, 0)),   # x   (tiled over batch)
        # Replicated weight/bias blocks (constant index_maps).
        # NOTE(perf, v7x headroom): add pipeline_mode=pl.Buffered(1) to these specs if
        # hidden ever scales up, to avoid double-buffering constant blocks in VMEM.
        pl.BlockSpec((in_dim, hidden), lambda i: (0, 0)),       # w1
        pl.BlockSpec((1, hidden), lambda i: (0, 0)),            # b1
        pl.BlockSpec((hidden, hidden), lambda i: (0, 0)),       # w2
        pl.BlockSpec((1, hidden), lambda i: (0, 0)),            # b2
        pl.BlockSpec((hidden, out_pad), lambda i: (0, 0)),      # w3 (lane-padded)
        pl.BlockSpec((1, out_pad), lambda i: (0, 0)),           # b3 (lane-padded)
    ]
    out_specs = pl.BlockSpec((batch_tile, out_pad), lambda i: (i, 0))

    # Advisory cost hint so XLA schedules this tiny custom call sensibly.
    flops = 2 * B * (in_dim * hidden + hidden * hidden + hidden * out_pad)
    bytes_accessed = int(
        B * in_dim * x.dtype.itemsize
        + (in_dim * hidden + hidden * hidden + hidden * out_pad) * 2   # bf16 weights
        + (hidden + hidden + out_pad) * 4                               # f32 biases
        + B * out_pad * jnp.dtype(out_dtype).itemsize)                  # output writeback

    out_padded = pl.pallas_call(
        _critic_kernel,
        out_shape=jax.ShapeDtypeStruct((B, out_pad), out_dtype),
        grid=grid,
        in_specs=in_specs,
        out_specs=out_specs,
        compiler_params=pltpu.CompilerParams(
            # Batch axis is embarrassingly parallel -> shards across v7x's 2 TCs.
            dimension_semantics=("parallel",),
            # At these shapes VMEM is a non-issue on all generations; raise
            # vmem_limit_bytes only if hidden/tile sizes grow substantially.
        ),
        cost_estimate=pl.CostEstimate(flops=int(flops), transcendentals=0,
                                      bytes_accessed=bytes_accessed),
    )(x, w1_c, b1_f, w2_c, b2_f, w3_p, b3_p)

    if return_padded:
        return out_padded  # lane-padded; fuse argmax / Q-gather in the consumer
    # TODO(synk): fuse the downstream consumer (argmax / Q-gather over the real
    # out_dim columns) into the kernel so only B x out_dim bytes ever hit HBM.
    return out_padded[:, :out_dim]


def init_critic_params(key, input_dim, hidden_dim, output_dim):
    """Deterministic PyTorch-style init: U(-1/sqrt(fan_in), 1/sqrt(fan_in))."""
    ks = jax.random.split(key, 6)

    def linear_init(kw, kb, fan_in, fan_out):
        bound = 1.0 / jnp.sqrt(jnp.float32(fan_in))
        w = jax.random.uniform(kw, (fan_in, fan_out), jnp.float32, -bound, bound)
        b = jax.random.uniform(kb, (1, fan_out), jnp.float32, -bound, bound)
        return w, b

    w1, b1 = linear_init(ks[0], ks[1], input_dim, hidden_dim)
    w2, b2 = linear_init(ks[2], ks[3], hidden_dim, hidden_dim)
    w3, b3 = linear_init(ks[4], ks[5], hidden_dim, output_dim)
    return (w1, b1, w2, b2, w3, b3)


def critic_reference_f32(x, params):
    """Pure-f32 reference (matches the PyTorch module's math)."""
    w1, b1, w2, b2, w3, b3 = params
    h1 = jnp.maximum(x @ w1 + b1, 0.0)
    h2 = jnp.maximum(h1 @ w2 + b2, 0.0)
    return h2 @ w3 + b3


def critic_reference_mixed(x, params):
    """Mirrors the kernel's precision: bf16 matmul operands, f32 accum, f32 biases."""
    w1, b1, w2, b2, w3, b3 = params
    bf = lambda a: a.astype(jnp.bfloat16).astype(jnp.float32)
    h1 = jnp.maximum(bf(x) @ bf(w1) + b1, 0.0)
    h2 = jnp.maximum(bf(h1) @ bf(w2) + b2, 0.0)
    return bf(h2) @ bf(w3) + b3


if __name__ == "__main__":
    # MountainCar-v0: observation dim = 2, action dim = 3.
    input_dim, hidden_dim, output_dim = 2, 32, 3

    key = jax.random.PRNGKey(0)
    k_params, k_x1, k_x2 = jax.random.split(key, 3)
    params = init_critic_params(k_params, input_dim, hidden_dim, output_dim)

    # --- Case 1: small batch, single exact tile, f32 output (module-equivalent). ---
    x1 = jax.random.normal(k_x1, (16, input_dim), dtype=jnp.float32)
    out1 = jax.block_until_ready(critic_forward(x1, params))
    assert out1.shape == (16, output_dim) and out1.dtype == jnp.float32
    ref1 = critic_reference_mixed(x1, params)
    assert jnp.allclose(out1, ref1, atol=2e-3, rtol=2e-3), \
        "Pallas output mismatch vs mixed-precision reference"
    max_diff = float(jnp.max(jnp.abs(out1 - critic_reference_f32(x1, params))))
    assert max_diff < 5e-2, f"unexpectedly large deviation from f32 reference: {max_diff}"

    # --- Case 2: bf16 output (halves the lane-padded writeback; for action selection). ---
    out1_bf = jax.block_until_ready(
        critic_forward(x1, params, out_dtype=jnp.bfloat16))
    assert out1_bf.dtype == jnp.bfloat16 and out1_bf.shape == (16, output_dim)
    assert jnp.allclose(out1_bf.astype(jnp.float32), ref1, atol=2e-2, rtol=2e-2), \
        "bf16-output path mismatch vs mixed-precision reference"

    # --- Case 3: ragged batch + multi-step grid (no host-side pad; masked last tile). ---
    x2 = jax.random.normal(k_x2, (50, input_dim), dtype=jnp.float32)
    out2 = jax.block_until_ready(critic_forward(x2, params, max_batch_tile=16))
    assert out2.shape == (50, output_dim)
    ref2 = critic_reference_mixed(x2, params)
    assert jnp.allclose(out2, ref2, atol=2e-3, rtol=2e-3), \
        "ragged-batch path mismatch vs mixed-precision reference"

    print("KERNEL_OK")
</pallas_src>

<mosaic_0001>
module attributes {stable_mosaic.version = 11 : i64} {
  func.func @_critic_kernel(%arg0: i32, %arg1: memref<16x2xf32, #tpu.memory_space<vmem>>, %arg2: memref<2x32xbf16, #tpu.memory_space<vmem>>, %arg3: memref<1x32xf32, #tpu.memory_space<vmem>>, %arg4: memref<32x32xbf16, #tpu.memory_space<vmem>>, %arg5: memref<1x32xf32, #tpu.memory_space<vmem>>, %arg6: memref<32x128xbf16, #tpu.memory_space<vmem>>, %arg7: memref<1x128xf32, #tpu.memory_space<vmem>>, %arg8: memref<16x128xf32, #tpu.memory_space<vmem>>) attributes {dimension_semantics = [#tpu.dimension_semantics<parallel>], iteration_bounds = array<i64: 1>, scalar_prefetch = 0 : i64, scratch_operands = 0 : i64, tpu.core_type = #tpu.core_type<tc>, window_params = [{transform_indices = @transform_0, window_bounds = array<i64: 16, 2>}, {pipeline_mode = #tpu.pipeline_mode<synchronous>, transform_indices = @transform_1, window_bounds = array<i64: 2, 32>}, {pipeline_mode = #tpu.pipeline_mode<synchronous>, transform_indices = @transform_2, window_bounds = array<i64: 1, 32>}, {pipeline_mode = #tpu.pipeline_mode<synchronous>, transform_indices = @transform_3, window_bounds = array<i64: 32, 32>}, {pipeline_mode = #tpu.pipeline_mode<synchronous>, transform_indices = @transform_4, window_bounds = array<i64: 1, 32>}, {pipeline_mode = #tpu.pipeline_mode<synchronous>, transform_indices = @transform_5, window_bounds = array<i64: 32, 128>}, {pipeline_mode = #tpu.pipeline_mode<synchronous>, transform_indices = @transform_6, window_bounds = array<i64: 1, 128>}, {transform_indices = @transform_7, window_bounds = array<i64: 16, 128>}]} {
    %c0 = arith.constant 0 : index
    %c0_0 = arith.constant 0 : index
    %0 = vector.load %arg1[%c0, %c0_0] : memref<16x2xf32, #tpu.memory_space<vmem>>, vector<16x2xf32>
    %1 = arith.truncf %0 : vector<16x2xf32> to vector<16x2xbf16>
    %c0_1 = arith.constant 0 : index
    %c0_2 = arith.constant 0 : index
    %2 = vector.load %arg2[%c0_1, %c0_2] : memref<2x32xbf16, #tpu.memory_space<vmem>>, vector<2x32xbf16>
    %cst = arith.constant dense<0.000000e+00> : vector<16x32xf32>
    %3 = tpu.matmul %1, %2, %cst {dimension_numbers = #tpu.dot_dimension_numbers<[1], [0], [0], [1], [0, 0, 1, 1], [], []>} : vector<16x2xbf16>, vector<2x32xbf16>, vector<16x32xf32> -> vector<16x32xf32>
    %c0_3 = arith.constant 0 : index
    %c0_4 = arith.constant 0 : index
    %4 = vector.load %arg3[%c0_3, %c0_4] : memref<1x32xf32, #tpu.memory_space<vmem>>, vector<1x32xf32>
    %5 = vector.broadcast %4 : vector<1x32xf32> to vector<16x32xf32>
    %6 = arith.addf %3, %5 : vector<16x32xf32>
    %cst_5 = arith.constant 0.000000e+00 : f32
    %7 = vector.broadcast %cst_5 : f32 to vector<16x32xf32>
    %8 = arith.maximumf %6, %7 : vector<16x32xf32>
    %9 = arith.truncf %8 : vector<16x32xf32> to vector<16x32xbf16>
    %c0_6 = arith.constant 0 : index
    %c0_7 = arith.constant 0 : index
    %10 = vector.load %arg4[%c0_6, %c0_7] : memref<32x32xbf16, #tpu.memory_space<vmem>>, vector<32x32xbf16>
    %cst_8 = arith.constant dense<0.000000e+00> : vector<16x32xf32>
    %11 = tpu.matmul %9, %10, %cst_8 {dimension_numbers = #tpu.dot_dimension_numbers<[1], [0], [0], [1], [0, 0, 1, 1], [], []>} : vector<16x32xbf16>, vector<32x32xbf16>, vector<16x32xf32> -> vector<16x32xf32>
    %c0_9 = arith.constant 0 : index
    %c0_10 = arith.constant 0 : index
    %12 = vector.load %arg5[%c0_9, %c0_10] : memref<1x32xf32, #tpu.memory_space<vmem>>, vector<1x32xf32>
    %13 = vector.broadcast %12 : vector<1x32xf32> to vector<16x32xf32>
    %14 = arith.addf %11, %13 : vector<16x32xf32>
    %cst_11 = arith.constant 0.000000e+00 : f32
    %15 = vector.broadcast %cst_11 : f32 to vector<16x32xf32>
    %16 = arith.maximumf %14, %15 : vector<16x32xf32>
    %17 = arith.truncf %16 : vector<16x32xf32> to vector<16x32xbf16>
    %c0_12 = arith.constant 0 : index
    %c0_13 = arith.constant 0 : index
    %18 = vector.load %arg6[%c0_12, %c0_13] : memref<32x128xbf16, #tpu.memory_space<vmem>>, vector<32x128xbf16>
    %cst_14 = arith.constant dense<0.000000e+00> : vector<16x128xf32>
    %19 = tpu.matmul %17, %18, %cst_14 {dimension_numbers = #tpu.dot_dimension_numbers<[1], [0], [0], [1], [0, 0, 1, 1], [], []>} : vector<16x32xbf16>, vector<32x128xbf16>, vector<16x128xf32> -> vector<16x128xf32>
    %c0_15 = arith.constant 0 : index
    %c0_16 = arith.constant 0 : index
    %20 = vector.load %arg7[%c0_15, %c0_16] : memref<1x128xf32, #tpu.memory_space<vmem>>, vector<1x128xf32>
    %21 = vector.broadcast %20 : vector<1x128xf32> to vector<16x128xf32>
    %22 = arith.addf %19, %21 : vector<16x128xf32>
    %c0_17 = arith.constant 0 : index
    %c0_18 = arith.constant 0 : index
    %23 = vector.load %arg8[%c0_17, %c0_18] : memref<16x128xf32, #tpu.memory_space<vmem>>, vector<16x128xf32>
    tpu.vector_store %arg8[%c0_17, %c0_18], %22 {strides = array<i32>} : memref<16x128xf32, #tpu.memory_space<vmem>>, vector<16x128xf32>,
    return
  }
  func.func @transform_0(%arg0: i32) -> (i32, i32) {
    %c0_i32 = arith.constant 0 : i32
    %c0_i32_0 = arith.constant 0 : i32
    return %arg0, %c0_i32 : i32, i32
  }
  func.func @transform_1(%arg0: i32) -> (i32, i32) {
    %c0_i32 = arith.constant 0 : i32
    %c0_i32_0 = arith.constant 0 : i32
    %c0_i32_1 = arith.constant 0 : i32
    return %c0_i32, %c0_i32_0 : i32, i32
  }
  func.func @transform_2(%arg0: i32) -> (i32, i32) {
    %c0_i32 = arith.constant 0 : i32
    %c0_i32_0 = arith.constant 0 : i32
    %c0_i32_1 = arith.constant 0 : i32
    return %c0_i32, %c0_i32_0 : i32, i32
  }
  func.func @transform_3(%arg0: i32) -> (i32, i32) {
    %c0_i32 = arith.constant 0 : i32
    %c0_i32_0 = arith.constant 0 : i32
    %c0_i32_1 = arith.constant 0 : i32
    return %c0_i32, %c0_i32_0 : i32, i32
  }
  func.func @transform_4(%arg0: i32) -> (i32, i32) {
    %c0_i32 = arith.constant 0 : i32
    %c0_i32_0 = arith.constant 0 : i32
    %c0_i32_1 = arith.constant 0 : i32
    return %c0_i32, %c0_i32_0 : i32, i32
  }
  func.func @transform_5(%arg0: i32) -> (i32, i32) {
    %c0_i32 = arith.constant 0 : i32
    %c0_i32_0 = arith.constant 0 : i32
    %c0_i32_1 = arith.constant 0 : i32
    return %c0_i32, %c0_i32_0 : i32, i32
  }
  func.func @transform_6(%arg0: i32) -> (i32, i32) {
    %c0_i32 = arith.constant 0 : i32
    %c0_i32_0 = arith.constant 0 : i32
    %c0_i32_1 = arith.constant 0 : i32
    return %c0_i32, %c0_i32_0 : i32, i32
  }
  func.func @transform_7(%arg0: i32) -> (i32, i32) {
    %c0_i32 = arith.constant 0 : i32
    %c0_i32_0 = arith.constant 0 : i32
    return %arg0, %c0_i32 : i32, i32
  }
}

</mosaic_0001>

<bundles_post_ra>
// kernel: tpu_custom_call.1
= control target key start
LH: loop header
LB: loop body
LE: loop exit
PB: predicated region body
PF: predicated region fallthrough
CT: control target
= control target key end

     0   :  { %12 = vsyncpa [#allocation3], 0  ;;  %s336_s0 = inlined_call_operand.vmem [shape: f32[16,2], index: 0, kind: input, shape index: {}]   ;;  %s337_s1 = inlined_call_operand.vmem [shape: bf16[2,32], index: 1, kind: input, shape index: {}]   ;;  %s338_s2 = inlined_call_operand.vmem [shape: f32[1,32], index: 2, kind: input, shape index: {}]   ;;  %s339_s3 = inlined_call_operand.vmem [shape: bf16[32,32], index: 3, kind: input, shape index: {}]   ;;  %s340_s4 = inlined_call_operand.vmem [shape: f32[1,32], index: 4, kind: input, shape index: {}]   ;;  %s341_s5 = inlined_call_operand.hbm [shape: bf16[32,128], index: 5, kind: input, shape index: {}]   ;;  %s342_s6 = inlined_call_operand.vmem [shape: f32[1,128], index: 6, kind: input, shape index: {}]   ;;  %s343_s7 = inlined_call_operand.hbm [shape: f32[16,128], index: 7, kind: output, shape index: {}]  }
   0x1   :  { %13 = vsyncpa [#allocation4], 0  ;;  %s28_s26 = sshll.u32 %s341_s5, 4  ;;  %s260_s27 = smov [#allocation2]   ;;  %s29_s26 = int_to_ptr.hbm [resolvable:$true] %s28_s26 }
   0x2   :  { %s30_s28 = sshll.u32 %s260_s27, 4  ;;  %s261_s29 = smov 64   ;;  %s31_s28 = int_to_ptr.vmem [resolvable:$true] %s30_s28 }
   0x3   :  { %s262_s30 = smov 4  }
   0x4   :  { %36 = dma.hbm_to_vmem [thread:$0]  %s29_s26, 256, %s31_s28, [#allocation3], %s261_s29, %s261_s29, %s262_s30  }
   0x5   :  { %256 = dma.done.wait [#allocation3], 256  }
   0x6   :  { %257 = vsyncadd [#allocation3], 4294967040  ;;  %vm56_vm0 = vcmask 1040384   ;;  %v47_v0 = vld [vmem:[%s337_s1] sm:$0x1]  ;;  %v45_v2 = vld [vmem:[%s336_s0 + $0x8] sm:$0xff] }
   0x7   :  { %v44_v1 = vld [vmem:[%s336_s0] sm:$0xff]  ;;  %v58_v3 = vsel %vm56_vm0, %v47_v0, 0  ;;  %vm52_vm1 = vcmask 15360   ;;  %v196_v5 = vld [vmem:[%s339_s3 + $0x8] sm:$0xff]  ;;  %vm97_vm2 = vcmask 261120   ;;  %s263_s19 = smov [#allocation5]  }
   0x8   :  { %v46_v4 = vpack.c.bf16 %v45_v2, %v44_v1  ;;  %67 = vmatpush.bf16.msra.mxu0 %v58_v3  ;;  %107 = vmatpush.bf16.msra.mxu1 %v196_v5  ;;  %v195_v6 = vld [vmem:[%s339_s3] sm:$0xff]  ;;  %v198_v15 = vld [vmem:[#allocation2 + $0x8] sm:$0xff]  ;;  %s161_s20 = sshll.u32 %s263_s19, 4  ;;  %s264_s23 = smov 128   ;;  %s162_s20 = int_to_ptr.vmem [resolvable:$true] %s161_s20 }
   0x9   :  { %v205_v8 = vld [vmem:[%s338_s2] ss:$0 sm:$0xff]  ;;  %147 = vmatpush.bf16.msra.mxu2 %v198_v15  ;;  %s265_s24 = smov 8  }
   0xa   :  { %v197_v16 = vld [vmem:[#allocation2] sm:$0xff] }
   0xb   :  { %176 = vmatmul.msk.bf16.vlgmr.msra.gmra.mxu0 %vm52_vm1, %v46_v4  ;;  %v206_v18 = vld [vmem:[%s340_s4] ss:$0 sm:$0xff]  ;;  %s163_s4 = sshll.u32 %s343_s7, 4  ;;  %s164_s4 = int_to_ptr.hbm [resolvable:$true] %s163_s4 }
   0xc   :  { %108 = vmatpush.bf16.msra.mxu1 %v195_v6  ;;  %v207_v25 = vld [vmem:[%s342_s6] ss:$0 sm:$0xff] }
   0xd   :  { %148 = vmatpush.bf16.msra.mxu2 %v197_v16 }
  0x88   :  { %v69_v7 = vpop.f32.mrf.mxu0 }
  0x89   :  { %v70_v9 = vadd.f32 %v205_v8, %v69_v7 }
  0x8b   :  { %v74_v12 = vmax.f32 %v70_v9, 0.0 }
  0x90   :  { %v71_v10 = vpop.f32.mrf.mxu0 }
  0x91   :  { %v72_v11 = vadd.f32 %v205_v8, %v71_v10 }
  0x93   :  { %v75_v13 = vmax.f32 %v72_v11, 0.0 }
  0x95   :  { %v76_v14 = vpack.c.bf16 %v75_v13, %v74_v12 }
  0x97   :  { %185 = vmatmul.msk.bf16.vlgmr.msra.gmra.mxu1 %vm97_vm2, %v76_v14 }
 0x114   :  { %v110_v17 = vpop.f32.mrf.mxu1 }
 0x115   :  { %v111_v19 = vadd.f32 %v206_v18, %v110_v17 }
 0x117   :  { %v115_v22 = vmax.f32 %v111_v19, 0.0 }
 0x11c   :  { %v112_v20 = vpop.f32.mrf.mxu1 }
 0x11d   :  { %v113_v21 = vadd.f32 %v206_v18, %v112_v20 }
 0x11f   :  { %v116_v23 = vmax.f32 %v113_v21, 0.0 }
 0x121   :  { %v117_v24 = vpack.c.bf16 %v116_v23, %v115_v22 }
 0x123   :  { %194 = vmatmul.msk.bf16.vlgmr.msra.gmra.mxu2 %vm97_vm2, %v117_v24 }
 0x1a6   :  { %v150_v26 = vpop.f32.mrf.mxu2 }
 0x1a7   :  { %v151_v27 = vadd.f32 %v207_v25, %v150_v26 }
 0x1a9   :  { %155 = vst [vmem:[#allocation5] sm:$0xff] %v151_v27 }
 0x1ae   :  { %v152_v28 = vpop.f32.mrf.mxu2 }
 0x1af   :  { %v153_v29 = vadd.f32 %v207_v25, %v152_v28 }
 0x1b1   :  { %156 = vst [vmem:[#allocation5 + $0x8] sm:$0xff] %v153_v29 }
 0x1b2   :  { %169 = dma.vmem_to_hbm [thread:$0]  %s162_s20, 256, %s164_s4, [#allocation4], %s264_s23, %s264_s23, %s265_s24  }
 0x1b3   :  { %258 = dma.done.wait [#allocation4], 256  }
 0x1b4   :  { %259 = vsyncadd [#allocation4], 4294967040 }
 0x1b5   :  { %174 = vsyncpa [#allocation3], 1 }
 0x1b6   :  { %175 = vsyncpa [#allocation4], 1 }

</bundles_post_ra>
